<compile_context>
chip_gen: v5e
topology: v5e:2x2
jax: 0.10.0
libtpu: 0.0.40
codegen_flags: <defaults>
</compile_context>

<pallas_src>
import jax
import jax.numpy as jnp
from jax.experimental import pallas as pl
from jax.experimental.pallas import tpu as pltpu

_LANE_W = 512             # lane-dense last dim (multiple of 128) -> unmasked vst
_BLOCK_ROWS = 1024        # 1024*512*4 B = 2 MiB f32 tile; 2 arrays x 2 buffers = 8 MiB VMEM
_MIN_PALLAS_ELEMS = 1 << 16   # below this, launch + pad overhead dominates -> plain jnp


def _poly_kernel(params_ref, x_ref, o_ref):
    # params_ref: SMEM f32[4] = [w1, w2, w3, b]  (scalar-prefetched once).
    w1 = params_ref[0]
    w2 = params_ref[1]
    w3 = params_ref[2]
    b = params_ref[3]
    x = x_ref[...]
    # Horner form: b + x*(w1 + x*(w2 + x*w3)).  Kernel is HBM-bound; the VPU
    # work here is free filler, so no further arithmetic restructuring.
    o_ref[...] = b + x * (w1 + x * (w2 + x * w3))


def net2_forward_2d(x2d, w1, w2, w3, b, *, block_rows=_BLOCK_ROWS):
    """Net_2 forward on a pre-padded, lane-dense (rows, LANE_W) f32 slab.

    Preferred entry point for large N: the caller keeps data in this layout so
    there are no wrapper-side pad/reshape or output-slice HBM round trips.
    """
    rows, lanes = x2d.shape
    assert lanes % 128 == 0, "last dim must be a multiple of 128 lanes"

    # Clamp the row block to the (8-rounded) row count; keep it a multiple of 8.
    block_rows = max(8, min(block_rows, ((rows + 7) // 8) * 8))
    grid = (pl.cdiv(rows, block_rows),)   # ragged last block handled by Pallas

    params = jnp.stack([w1, w2, w3, b]).astype(jnp.float32)

    # TODO(synk): on v7x, block_rows=2048-4096 with vmem_limit_bytes~48<<20 and
    # CORE_PARALLEL on the row axis is worth a sweep; 1024 + "parallel" is the
    # portable default that stays inside v5e's 16 MiB scoped VMEM.
    return pl.pallas_call(
        _poly_kernel,
        out_shape=jax.ShapeDtypeStruct(x2d.shape, jnp.float32),
        grid_spec=pltpu.PrefetchScalarGridSpec(
            num_scalar_prefetch=1,          # params -> SMEM, DMA'd once
            grid=grid,
            in_specs=[
                pl.BlockSpec((block_rows, lanes), lambda i, params: (i, 0)),
            ],
            out_specs=pl.BlockSpec((block_rows, lanes), lambda i, params: (i, 0)),
        ),
        compiler_params=pltpu.CompilerParams(
            dimension_semantics=("parallel",),
        ),
    )(params, x2d)


def net2_forward(x, w1, w2, w3, b, *, force_pallas=False, block_rows=_BLOCK_ROWS):
    """Pallas implementation of Net_2.forward for a 1-D float32 input x."""
    x = jnp.asarray(x, jnp.float32)
    n = x.shape[0]

    if not force_pallas and n < _MIN_PALLAS_ELEMS:
        # Tiny inputs: fixed pallas_call + pad/reshape cost dominates, and XLA
        # fuses this elementwise polynomial into a single pass anyway.
        return b + x * (w1 + x * (w2 + x * w3))

    # Pad only to a lane-dense slab; rows rounded up to the 8-sublane granule.
    rows = pl.cdiv(n, _LANE_W)
    rows_padded = ((rows + 7) // 8) * 8
    n_pad = rows_padded * _LANE_W
    # TODO(synk): for very large N, call net2_forward_2d with a pre-padded slab
    # to eliminate this pad/reshape and the final reshape(-1)[:n] HBM copies.
    x2d = jnp.pad(x, (0, n_pad - n)).reshape(rows_padded, _LANE_W)

    out2d = net2_forward_2d(x2d, w1, w2, w3, b, block_rows=block_rows)
    return out2d.reshape(-1)[:n]


if __name__ == "__main__":
    key = jax.random.PRNGKey(0)
    k1, k2, k3, k4 = jax.random.split(key, 4)

    # Deterministic scalar parameters (mirrors torch.randn(()) x4).
    w1 = jax.random.normal(k1, (), jnp.float32)
    w2 = jax.random.normal(k2, (), jnp.float32)
    w3 = jax.random.normal(k3, (), jnp.float32)
    b = jax.random.normal(k4, (), jnp.float32)

    # Input consistent with the script: x = np.linspace(-3, 3, 100).
    num_observation = 100
    x = jnp.linspace(-3.0, 3.0, num_observation, dtype=jnp.float32)

    # Force the Pallas path (the auto-dispatch would use plain jnp at N=100).
    y = jax.block_until_ready(net2_forward(x, w1, w2, w3, b, force_pallas=True))
    y_ref = b + w1 * x + w2 * x**2 + w3 * x**3
    assert y.shape == (num_observation,)
    assert jnp.allclose(y, y_ref, atol=1e-5, rtol=1e-5)

    # Second check: multi-row slab exercising padding + ragged slice handling.
    n2 = 12345
    x2 = jnp.linspace(-3.0, 3.0, n2, dtype=jnp.float32)
    y2 = jax.block_until_ready(net2_forward(x2, w1, w2, w3, b, force_pallas=True))
    y2_ref = b + w1 * x2 + w2 * x2**2 + w3 * x2**3
    assert y2.shape == (n2,)
    assert jnp.allclose(y2, y2_ref, atol=1e-5, rtol=1e-5)

    print("KERNEL_OK")
</pallas_src>

<mosaic_0001>
module attributes {stable_mosaic.version = 11 : i64} {
  func.func @_poly_kernel(%arg0: i32, %arg1: memref<4xf32, #tpu.memory_space<smem>>, %arg2: memref<8x512xf32, #tpu.memory_space<vmem>>, %arg3: memref<8x512xf32, #tpu.memory_space<vmem>>) attributes {dimension_semantics = [#tpu.dimension_semantics<parallel>], iteration_bounds = array<i64: 1>, scalar_prefetch = 1 : i64, scratch_operands = 0 : i64, tpu.core_type = #tpu.core_type<tc>, window_params = [{transform_indices = @transform_0, window_bounds = array<i64: 8, 512>}, {transform_indices = @transform_1, window_bounds = array<i64: 8, 512>}]} {
    %c0 = arith.constant 0 : index
    %0 = memref.load %arg1[%c0] : memref<4xf32, #tpu.memory_space<smem>>
    %c1 = arith.constant 1 : index
    %1 = memref.load %arg1[%c1] : memref<4xf32, #tpu.memory_space<smem>>
    %c2 = arith.constant 2 : index
    %2 = memref.load %arg1[%c2] : memref<4xf32, #tpu.memory_space<smem>>
    %c3 = arith.constant 3 : index
    %3 = memref.load %arg1[%c3] : memref<4xf32, #tpu.memory_space<smem>>
    %c0_0 = arith.constant 0 : index
    %c0_1 = arith.constant 0 : index
    %4 = vector.load %arg2[%c0_0, %c0_1] : memref<8x512xf32, #tpu.memory_space<vmem>>, vector<8x512xf32>
    %5 = vector.broadcast %2 : f32 to vector<8x512xf32>
    %6 = arith.mulf %4, %5 : vector<8x512xf32>
    %7 = vector.broadcast %1 : f32 to vector<8x512xf32>
    %8 = arith.addf %7, %6 : vector<8x512xf32>
    %9 = arith.mulf %4, %8 : vector<8x512xf32>
    %10 = vector.broadcast %0 : f32 to vector<8x512xf32>
    %11 = arith.addf %10, %9 : vector<8x512xf32>
    %12 = arith.mulf %4, %11 : vector<8x512xf32>
    %13 = vector.broadcast %3 : f32 to vector<8x512xf32>
    %14 = arith.addf %13, %12 : vector<8x512xf32>
    %c0_2 = arith.constant 0 : index
    %c0_3 = arith.constant 0 : index
    %15 = vector.load %arg3[%c0_2, %c0_3] : memref<8x512xf32, #tpu.memory_space<vmem>>, vector<8x512xf32>
    tpu.vector_store %arg3[%c0_2, %c0_3], %14 {strides = array<i32>} : memref<8x512xf32, #tpu.memory_space<vmem>>, vector<8x512xf32>,
    return
  }
  func.func @transform_0(%arg0: i32, %arg1: memref<4xf32, #tpu.memory_space<smem>>) -> (i32, i32) {
    %c0_i32 = arith.constant 0 : i32
    %c0_i32_0 = arith.constant 0 : i32
    return %arg0, %c0_i32 : i32, i32
  }
  func.func @transform_1(%arg0: i32, %arg1: memref<4xf32, #tpu.memory_space<smem>>) -> (i32, i32) {
    %c0_i32 = arith.constant 0 : i32
    %c0_i32_0 = arith.constant 0 : i32
    return %arg0, %c0_i32 : i32, i32
  }
}

</mosaic_0001>

<bundles_post_ra>
// kernel: tpu_custom_call.1
= control target key start
LH: loop header
LB: loop body
LE: loop exit
PB: predicated region body
PF: predicated region fallthrough
CT: control target
= control target key end

     0   :  { %s161_s12 = smov [#allocation3]   ;;  %s188_s0 = inlined_call_operand.hbm [shape: f32[4], index: 0, kind: input, shape index: {}]   ;;  %s189_s1 = inlined_call_operand.hbm [shape: f32[8,512], index: 1, kind: input, shape index: {}]   ;;  %s190_s2 = inlined_call_operand.hbm [shape: f32[8,512], index: 2, kind: output, shape index: {}]  }
   0x1   :  { %s8_s11 = sshll.u32 %s188_s0, 4  ;;  %s9_s11 = int_to_ptr.hbm [resolvable:$true] %s8_s11 }
   0x2   :  { %11 = dma.hbm_to_smem %s9_s11, 16, %s161_s12, [#allocation2] }
   0x3   :  { %155 = dma.done.wait [#allocation2], 16 }
   0x4   :  { %156 = vsyncadd [#allocation2], 4294967280 }
   0x5   :  { %14 = sfence }
   0x6   :  { %15 = vsyncpa [#allocation5], 0 }
   0x7   :  { %16 = vsyncpa [#allocation6], 0  ;;  %s22_s15 = sshll.u32 %s189_s1, 4  ;;  %s162_s16 = smov [#allocation4]   ;;  %s23_s15 = int_to_ptr.hbm [resolvable:$true] %s22_s15 }
   0x8   :  { %s24_s17 = sshll.u32 %s162_s16, 4  ;;  %s25_s17 = int_to_ptr.vmem [resolvable:$true] %s24_s17 }
   0x9   :  { %27 = dma.hbm_to_vmem [thread:$0]  %s23_s15, 512, %s25_s17, [#allocation5]  }
   0xa   :  { %157 = dma.done.wait [#allocation5], 512  }
   0xb   :  { %158 = vsyncadd [#allocation5], 4294966784  ;;  %s89_s0 = sld [smem:[#allocation3 + $0x1]]  ;;  %v36_v0 = vld [vmem:[#allocation4] sm:$0xff]  ;;  %v37_v1 = vld [vmem:[#allocation4 + $0x8] sm:$0xff]  ;;  %s163_s1 = smov [#allocation7]  }
   0xc   :  { %s90_s18 = sld [smem:[#allocation3 + $0x2]]  ;;  %v38_v2 = vld [vmem:[#allocation4 + $0x10] sm:$0xff]  ;;  %v39_v3 = vld [vmem:[#allocation4 + $0x18] sm:$0xff]  ;;  %s77_s21 = sshll.u32 %s163_s1, 4  ;;  %s78_s21 = int_to_ptr.vmem [resolvable:$true] %s77_s21 }
   0xd   :  { %s32_s19 = sld [smem:[#allocation3]]  ;;  %s79_s24 = sshll.u32 %s190_s2, 4  ;;  %s80_s24 = int_to_ptr.hbm [resolvable:$true] %s79_s24 }
   0xe   :  { %s91_s20 = sld [smem:[#allocation3 + $0x3]] }
  0x11   :  { %v45_v5 = vstv %s89_s0 }
  0x12   :  { %v40_v4 = vstv %s90_s18 }
  0x13   :  { %v41_v6 = vmul.f32 %v40_v4, %v36_v0  ;;  %v42_v7 = vmul.f32 %v40_v4, %v37_v1  ;;  %v43_v8 = vmul.f32 %v40_v4, %v38_v2  ;;  %v44_v9 = vmul.f32 %v40_v4, %v39_v3 }
  0x14   :  { %v54_v13 = vstv %s32_s19  ;;  %v63_v22 = vstv %s91_s20 }
  0x15   :  { %v46_v10 = vadd.f32 %v45_v5, %v41_v6  ;;  %v47_v11 = vadd.f32 %v45_v5, %v42_v7  ;;  %v48_v12 = vadd.f32 %v45_v5, %v43_v8  ;;  %v49_v14 = vadd.f32 %v45_v5, %v44_v9 }
  0x17   :  { %v50_v15 = vmul.f32 %v46_v10, %v36_v0  ;;  %v51_v16 = vmul.f32 %v47_v11, %v37_v1  ;;  %v52_v17 = vmul.f32 %v48_v12, %v38_v2  ;;  %v53_v18 = vmul.f32 %v49_v14, %v39_v3 }
  0x19   :  { %v55_v19 = vadd.f32 %v54_v13, %v50_v15  ;;  %v56_v20 = vadd.f32 %v54_v13, %v51_v16  ;;  %v57_v21 = vadd.f32 %v54_v13, %v52_v17  ;;  %v58_v23 = vadd.f32 %v54_v13, %v53_v18 }
  0x1b   :  { %v59_v24 = vmul.f32 %v55_v19, %v36_v0  ;;  %v60_v25 = vmul.f32 %v56_v20, %v37_v1  ;;  %v61_v26 = vmul.f32 %v57_v21, %v38_v2  ;;  %v62_v27 = vmul.f32 %v58_v23, %v39_v3 }
  0x1d   :  { %v64_v28 = vadd.f32 %v63_v22, %v59_v24  ;;  %v65_v29 = vadd.f32 %v63_v22, %v60_v25  ;;  %v66_v30 = vadd.f32 %v63_v22, %v61_v26  ;;  %v67_v31 = vadd.f32 %v63_v22, %v62_v27 }
  0x1f   :  { %68 = vst [vmem:[#allocation7] sm:$0xff] %v64_v28 }
  0x20   :  { %69 = vst [vmem:[#allocation7 + $0x8] sm:$0xff] %v65_v29 }
  0x21   :  { %70 = vst [vmem:[#allocation7 + $0x10] sm:$0xff] %v66_v30 }
  0x22   :  { %71 = vst [vmem:[#allocation7 + $0x18] sm:$0xff] %v67_v31 }
  0x23   :  { %82 = dma.vmem_to_hbm [thread:$0]  %s78_s21, 512, %s80_s24, [#allocation6]  }
  0x24   :  { %159 = dma.done.wait [#allocation6], 512  }
  0x25   :  { %160 = vsyncadd [#allocation6], 4294966784 }
  0x26   :  { %87 = vsyncpa [#allocation5], 1 }
  0x27   :  { %88 = vsyncpa [#allocation6], 1 }

</bundles_post_ra>
